<compile_context>
chip_gen: v7x
topology: tpu7x:2x2x1
jax: 0.10.0
libtpu: 0.0.40
codegen_flags: <defaults>
</compile_context>

<pallas_src>
import jax
import jax.numpy as jnp
from jax import lax
from jax.experimental import pallas as pl
from jax.experimental.pallas import tpu as pltpu
import numpy as np


def _conv_rff_kernel(mu_ref, sg_ref, eps_ref, p_ref, o_ref, w_ref):
    """One (OC, CK) x (CK, TM) matmul tile; reparam weight cached in VMEM per group."""
    # Reparameterise the per-group weight once per group.  The inner grid axis
    # only walks M tiles, so the weight (group-dependent only) is computed at
    # m_tile == 0 and reused for every subsequent tile of this group.  Store it
    # already cast to the matmul input dtype so no per-tile cast is needed.
    @pl.when(pl.program_id(1) == 0)
    def _():
        w32 = (mu_ref[...].astype(jnp.float32)
               + sg_ref[...].astype(jnp.float32) * eps_ref[...].astype(jnp.float32))
        w_ref[...] = w32.astype(w_ref.dtype)

    p = p_ref[...]                                            # (CK, TM) lane-dense M
    w = w_ref[...]                                            # (OC, CK)
    acc = lax.dot_general(w, p, (((1,), (0,)), ((), ())),
                          preferred_element_type=jnp.float32)  # (OC, TM)
    o_ref[...] = acc.astype(o_ref.dtype)


def conv_rff_linear_forward(phi, w_mu, w_logsigma, w_eps, *, mc, in_channels,
                            out_channels, kernel_size, stride, padding,
                            kernel_scale, block_m=512):
    """Pallas implementation of ConvRFFLinearLayer.forward."""
    N, Cin, L = phi.shape
    Cg = kernel_scale * in_channels              # input channels per group
    assert Cin == mc * Cg, "phi channel dim must be mc * kernel_scale * in_channels"
    assert in_channels == out_channels, "module's weight view requires ic == oc"
    K = kernel_size
    OC = out_channels
    CK = Cg * K                                  # contraction length per group
    L_pad = L + 2 * padding
    L_out = (L_pad - K) // stride + 1
    M = N * L_out                                # batch folded into matmul M axis

    # ---- tile sizing (lane dim must be a multiple of 128) ----
    if M <= block_m:
        TM = max(128, ((M + 127) // 128) * 128)
    else:
        TM = block_m
    Mp = ((M + TM - 1) // TM) * TM
    n_m = Mp // TM

    # ---- glue: im2col patch extraction, M-major / lane-dense layout ----
    # TODO(synk): build patches in-kernel (K shifted strided reads) to avoid the
    #             ~K/stride-fold HBM duplication of wrapper-side im2col.
    x_pad = jnp.pad(phi, ((0, 0), (0, 0), (padding, padding)))
    x_g = x_pad.reshape(N, mc, Cg, L_pad)
    idx = jnp.arange(L_out)[:, None] * stride + jnp.arange(K)[None, :]   # (L_out, K)
    windows = x_g[:, :, :, idx]                               # (N, mc, Cg, L_out, K)
    # patches[g, c*K + j, n*L_out + t] = x_pad[n, g*Cg + c, t*stride + j]
    patches = jnp.transpose(windows, (1, 2, 4, 0, 3)).reshape(mc, CK, M)
    if Mp != M:
        patches = jnp.pad(patches, ((0, 0), (0, 0), (0, Mp - M)))

    # ---- glue: parameter re-layout (pure reshape) + sigma precompute ----
    # PyTorch W_q.view(mc*oc, ks*ic, K); per-group slice == row-major reshape(OC, CK).
    mu_r = w_mu.reshape(OC, CK)
    sg_r = jnp.exp(0.5 * w_logsigma.astype(jnp.float32)).reshape(OC, CK)
    eps_r = w_eps.reshape(mc, OC, CK)

    itemsize = jnp.dtype(phi.dtype).itemsize
    cost = pl.CostEstimate(
        flops=2 * mc * OC * CK * Mp,
        transcendentals=0,
        bytes_accessed=(mc * CK * Mp + mc * OC * Mp) * itemsize
                       + (2 + mc) * OC * CK * 4)

    out_p = pl.pallas_call(
        _conv_rff_kernel,
        out_shape=jax.ShapeDtypeStruct((mc, OC, Mp), phi.dtype),
        grid_spec=pltpu.PrefetchScalarGridSpec(
            num_scalar_prefetch=0,
            grid=(mc, n_m),
            in_specs=[
                pl.BlockSpec((OC, CK), lambda g, m: (0, 0)),           # mu    (1 DMA total)
                pl.BlockSpec((OC, CK), lambda g, m: (0, 0)),           # sigma (1 DMA total)
                pl.BlockSpec((None, OC, CK), lambda g, m: (g, 0, 0)),  # eps   (1 DMA / group)
                pl.BlockSpec((None, CK, TM), lambda g, m: (g, 0, m)),  # patches
            ],
            out_specs=pl.BlockSpec((None, OC, TM), lambda g, m: (g, 0, m)),
            scratch_shapes=[pltpu.VMEM((OC, CK), phi.dtype)],          # cached W_g
        ),
        compiler_params=pltpu.CompilerParams(
            dimension_semantics=("parallel", "arbitrary"),
            vmem_limit_bytes=48 * 1024 * 1024),
        cost_estimate=cost,
    )(mu_r, sg_r, eps_r, patches)

    # ---- glue: back to PyTorch output layout (N, mc*oc, L_out) ----
    out_p = out_p[:, :, :M].reshape(mc, OC, N, L_out)
    F_y = jnp.transpose(out_p, (2, 0, 1, 3)).reshape(N, mc * OC, L_out)
    return F_y


def _reference_forward(phi, w_mu, w_logsigma, w_eps, *, mc, in_channels,
                       out_channels, kernel_size, stride, padding,
                       kernel_scale):
    """Pure-JAX reference mirroring the PyTorch module exactly."""
    w_var = jnp.exp(w_logsigma * 0.5)
    W_q = w_mu[None] + w_var[None] * w_eps                           # (mc, R, oc)
    w_conv = W_q.reshape(mc * out_channels, kernel_scale * in_channels, kernel_size)
    return lax.conv_general_dilated(
        phi, w_conv, window_strides=(stride,), padding=[(padding, padding)],
        dimension_numbers=("NCH", "OIH", "NCH"), feature_group_count=mc)


if __name__ == "__main__":
    # Module hyper-parameters (small, consistent with the forward pass).
    kernel_name = "rbf"
    kernel_scale = 2 if kernel_name == "rbf" else 1
    F0 = 10                      # stored but unused in forward
    mc = 2
    in_channels = 4
    out_channels = 4             # weight view requires ic == oc
    kernel_size = 3
    stride = 2
    padding = 1

    N, L = 2, 16
    Cin = mc * kernel_scale * in_channels          # 16
    R = kernel_scale * out_channels * kernel_size  # 24

    key = jax.random.PRNGKey(0)
    k_eps, k_phi = jax.random.split(key)

    # Deterministic parameter init (matches __init__ shapes).
    w_mu = jnp.zeros((R, out_channels), jnp.float32)
    w_logsigma = jnp.ones((R, out_channels), jnp.float32)
    w_eps = jax.random.normal(k_eps, (mc, R, out_channels), jnp.float32)

    phi = jax.random.normal(k_phi, (N, Cin, L), jnp.float32)

    hp = dict(mc=mc, in_channels=in_channels, out_channels=out_channels,
              kernel_size=kernel_size, stride=stride, padding=padding,
              kernel_scale=kernel_scale)

    out = conv_rff_linear_forward(phi, w_mu, w_logsigma, w_eps, **hp)
    out = jax.block_until_ready(out)

    ref = _reference_forward(phi, w_mu, w_logsigma, w_eps, **hp)
    np.testing.assert_allclose(np.asarray(out), np.asarray(ref),
                               rtol=1e-5, atol=1e-5)

    print("KERNEL_OK")
</pallas_src>

<mosaic_0001>
module attributes {stable_mosaic.version = 11 : i64} {
  func.func @_conv_rff_kernel(%arg0: i32, %arg1: i32, %arg2: memref<4x24xf32, #tpu.memory_space<vmem>>, %arg3: memref<4x24xf32, #tpu.memory_space<vmem>>, %arg4: memref<1x4x24xf32, #tpu.memory_space<vmem>>, %arg5: memref<1x24x128xf32, #tpu.memory_space<vmem>>, %arg6: memref<1x4x128xf32, #tpu.memory_space<vmem>>, %arg7: memref<4x24xf32, #tpu.memory_space<vmem>>) attributes {dimension_semantics = [#tpu.dimension_semantics<parallel>, #tpu.dimension_semantics<arbitrary>], iteration_bounds = array<i64: 2, 1>, scalar_prefetch = 0 : i64, scratch_operands = 1 : i64, tpu.core_type = #tpu.core_type<tc>, window_params = [{pipeline_mode = #tpu.pipeline_mode<synchronous>, transform_indices = @transform_0, window_bounds = array<i64: 4, 24>}, {pipeline_mode = #tpu.pipeline_mode<synchronous>, transform_indices = @transform_1, window_bounds = array<i64: 4, 24>}, {transform_indices = @transform_2, window_bounds = array<i64: 1, 4, 24>}, {transform_indices = @transform_3, window_bounds = array<i64: 1, 24, 128>}, {transform_indices = @transform_4, window_bounds = array<i64: 1, 4, 128>}]} {
    %c0_i32 = arith.constant 0 : i32
    %0 = arith.cmpi eq, %arg1, %c0_i32 : i32
    %1 = arith.extui %0 : i1 to i32
    %c0_i32_0 = arith.constant 0 : i32
    %2 = arith.cmpi ne, %1, %c0_i32_0 : i32
    scf.if %2 {
      %c0_8 = arith.constant 0 : index
      %c0_9 = arith.constant 0 : index
      %10 = vector.load %arg2[%c0_8, %c0_9] : memref<4x24xf32, #tpu.memory_space<vmem>>, vector<4x24xf32>
      %c0_10 = arith.constant 0 : index
      %c0_11 = arith.constant 0 : index
      %11 = vector.load %arg3[%c0_10, %c0_11] : memref<4x24xf32, #tpu.memory_space<vmem>>, vector<4x24xf32>
      %c0_12 = arith.constant 0 : index
      %c0_13 = arith.constant 0 : index
      %c0_14 = arith.constant 0 : index
      %12 = vector.load %arg4[%c0_12, %c0_13, %c0_14] : memref<1x4x24xf32, #tpu.memory_space<vmem>>, vector<1x4x24xf32>
      %13 = vector.shape_cast %12 : vector<1x4x24xf32> to vector<4x24xf32>
      %14 = arith.mulf %11, %13 : vector<4x24xf32>
      %15 = arith.addf %10, %14 : vector<4x24xf32>
      %c0_15 = arith.constant 0 : index
      %c0_16 = arith.constant 0 : index
      %16 = vector.load %arg7[%c0_15, %c0_16] : memref<4x24xf32, #tpu.memory_space<vmem>>, vector<4x24xf32>
      tpu.vector_store %arg7[%c0_15, %c0_16], %15 {strides = array<i32>} : memref<4x24xf32, #tpu.memory_space<vmem>>, vector<4x24xf32>,
    } else {
    }
    %c0 = arith.constant 0 : index
    %c0_1 = arith.constant 0 : index
    %c0_2 = arith.constant 0 : index
    %3 = vector.load %arg5[%c0, %c0_1, %c0_2] : memref<1x24x128xf32, #tpu.memory_space<vmem>>, vector<1x24x128xf32>
    %4 = vector.shape_cast %3 : vector<1x24x128xf32> to vector<24x128xf32>
    %c0_3 = arith.constant 0 : index
    %c0_4 = arith.constant 0 : index
    %5 = vector.load %arg7[%c0_3, %c0_4] : memref<4x24xf32, #tpu.memory_space<vmem>>, vector<4x24xf32>
    %cst = arith.constant dense<0.000000e+00> : vector<4x128xf32>
    %6 = tpu.matmul %5, %4, %cst {dimension_numbers = #tpu.dot_dimension_numbers<[1], [0], [0], [1], [0, 0, 1, 1], [], []>} : vector<4x24xf32>, vector<24x128xf32>, vector<4x128xf32> -> vector<4x128xf32>
    %c0_5 = arith.constant 0 : index
    %c0_6 = arith.constant 0 : index
    %c0_7 = arith.constant 0 : index
    %7 = vector.load %arg6[%c0_5, %c0_6, %c0_7] : memref<1x4x128xf32, #tpu.memory_space<vmem>>, vector<1x4x128xf32>
    %8 = vector.shape_cast %7 : vector<1x4x128xf32> to vector<4x128xf32>
    %9 = vector.shape_cast %6 : vector<4x128xf32> to vector<1x4x128xf32>
    tpu.vector_store %arg6[%c0_5, %c0_6, %c0_7], %9 {strides = array<i32>} : memref<1x4x128xf32, #tpu.memory_space<vmem>>, vector<1x4x128xf32>,
    return
  }
  func.func @transform_0(%arg0: i32, %arg1: i32) -> (i32, i32) {
    %c0_i32 = arith.constant 0 : i32
    %c0_i32_0 = arith.constant 0 : i32
    %c0_i32_1 = arith.constant 0 : i32
    return %c0_i32, %c0_i32_0 : i32, i32
  }
  func.func @transform_1(%arg0: i32, %arg1: i32) -> (i32, i32) {
    %c0_i32 = arith.constant 0 : i32
    %c0_i32_0 = arith.constant 0 : i32
    %c0_i32_1 = arith.constant 0 : i32
    return %c0_i32, %c0_i32_0 : i32, i32
  }
  func.func @transform_2(%arg0: i32, %arg1: i32) -> (i32, i32, i32) {
    %c0_i32 = arith.constant 0 : i32
    %c0_i32_0 = arith.constant 0 : i32
    %c0_i32_1 = arith.constant 0 : i32
    return %arg0, %c0_i32, %c0_i32_0 : i32, i32, i32
  }
  func.func @transform_3(%arg0: i32, %arg1: i32) -> (i32, i32, i32) {
    %c0_i32 = arith.constant 0 : i32
    %c0_i32_0 = arith.constant 0 : i32
    return %arg0, %c0_i32, %arg1 : i32, i32, i32
  }
  func.func @transform_4(%arg0: i32, %arg1: i32) -> (i32, i32, i32) {
    %c0_i32 = arith.constant 0 : i32
    %c0_i32_0 = arith.constant 0 : i32
    return %arg0, %c0_i32, %arg1 : i32, i32, i32
  }
}

</mosaic_0001>

<bundles_post_ra>
// kernel: tpu_custom_call.1
= control target key start
LH: loop header
LB: loop body
LE: loop exit
PB: predicated region body
PF: predicated region fallthrough
CT: control target
= control target key end

     0   :  { %s1171_s0 = inlined_call_operand.hbm [shape: f32[4,24], index: 0, kind: input, shape index: {}]   ;;  %s1172_s1 = inlined_call_operand.hbm [shape: f32[4,24], index: 1, kind: input, shape index: {}]   ;;  %s1173_s2 = inlined_call_operand.hbm [shape: f32[2,4,24], index: 2, kind: input, shape index: {}]   ;;  %s1174_s3 = inlined_call_operand.hbm [shape: f32[2,24,128], index: 3, kind: input, shape index: {}]   ;;  %s1175_s4 = inlined_call_operand.hbm [shape: f32[2,4,128], index: 4, kind: output, shape index: {}]  }
   0x1   :  { %1185 = sst [smem:[#allocation16_spill]] %s1171_s0 }
   0x2   :  { %1186 = sst [smem:[#allocation17_spill]] %s1173_s2 }
   0x3   :  { %9 = vsyncpa [#allocation4], 0 }
   0x4   :  { %10 = vsyncpa [#allocation7], 0 }
   0x5   :  { %11 = vsyncpa [#allocation5], 0 }
   0x6   :  { %13 = vsyncpa [#allocation5 + $0x1], 0  ;;  %s889_s15 = smov 0   ;;  %s891_s16 = smov 0  }
   0x7   :  { %s893_s17 = smov 0   ;;  %s895_s18 = smov 0  }
   0x8   :  { %s897_s19 = smov 0   ;;  %s899_s20 = smov 0  }
   0x9 LB: > { %s920_s21 = sadd.s32 4294967295, %s852_s20   ;;  %s516_s22 = sadd.s32 4294967294, %s852_s20   ;;  %s852_s20 = sphi %s899_s20, %s19_s20   ;;  %s848_s19 = sphi %s897_s19, %s1218_s19   ;;  %s844_s18 = sphi %s895_s18, %s1217_s18   ;;  %s840_s17 = sphi %s893_s17, %s1216_s17   ;;  %s836_s16 = sphi %s891_s16, %s1215_s16   ;;  %s832_s15 = sphi %s889_s15, %s1214_s15  }
   0xa   : > { %p93_p0 = scmp.ne.s32.totalorder %s836_s16, %s832_s15  ;;  %p1176_p1 = scmp.eq.s32.totalorder %s920_s21, 0 }
   0xb   : > { %p153_p3 = scmp.eq.s32.totalorder %s516_s22, 1  ;;  %p517_p5 = scmp.ge.s32.totalorder %s852_s20, 1 }
   0xc   : > { %p929_p4 = por %p1176_p1, %p93_p0  ;;  %p160_p7 = scmp.lt.s32.totalorder %s852_s20, 3 }
   0xd   : > { %p934_p6 = por %p153_p3, %p93_p0  ;;  %s854_s26 = smov [#allocation3]  }
   0xe   : > { %s1187_s23 = scalar_select %p929_p4, 1, 0 }
   0xf   : > { %s1188_s24 = scalar_select %p934_p6, 1, 0 }
  0x10   : > { %p939_p8 = pnand %p517_p5, %p160_p7  ;;  %s173_s27 = sshll.u32 %s854_s26, 4  ;;  %s174_s27 = int_to_ptr.vmem [resolvable:$true] %s173_s27 }
  0x11   : > { %s31_s29 = sadd.s32 1, %s848_s19  ;;  %s80_s30 = sadd.s32 1, %s840_s17 }
  0x12   : > { %s1189_s25 = scalar_select %p939_p8, 1, 0 }
  0x13   : > { %p567_p10 = pneg %p939_p8  ;;  %p954_p12 = scmp.ge.s32.totalorder %s31_s29, 2 }
  0x14   : > { %s1192_s0 = sld [smem:[#allocation16_spill]] }
  0x15   : > { %p948_p11 = pnand %p567_p10, %p1176_p1 }
  0x16   : > { %s1191_s5 = scalar_select %p954_p12, 1, 0 }
  0x17   : > { %p1179_p0 = pneg %p948_p11 }
  0x1a   : > { %s646_s8 = scalar_lea.hbm %s1192_s0, 64 }
  0x1b   : > { %p647_p13 = scmp.ne.s32.totalorder %s1192_s0, %s646_s8  ;;  %p653_p7 = scmp.lt.u32.totalorder %s646_s8, %s1192_s0 }
  0x1d   : > { %p649_p3 = pnand %p1179_p0, %p647_p13 }
  0x1f   : > { %p650_p5 = pneg %p649_p3 }
  0x21   : > { %p655_p10 = pnand %p653_p7, %p650_p5 }
  0x23   : > { %658 = shalt.err (!%p655_p10)
}
  0x24   : > { %s659_s13 = scalar_lea.vmem %s174_s27, 64  ;;  %p667_p6 = scmp.lt.s32.totalorder %s174_s27, %s174_s27 }
  0x25   : > { %p660_p9 = scmp.ne.s32.totalorder %s174_s27, %s659_s13  ;;  %p668_p4 = scmp.lt.s32.totalorder %s659_s13, %s659_s13 }
  0x27   : > { %p662_p1 = pnand %p660_p9, %p1179_p0  ;;  %p669_p8 = por %p668_p4, %p667_p6 }
  0x29   : > { %p663_p2 = pneg %p662_p1 }
  0x2b   : > { %p670_p12 = pnand %p669_p8, %p663_p2 }
  0x2d   : > { %673 = shalt.err (!%p670_p12)
}
  0x2e   : > { %570 = dma.hbm_to_vmem [thread:$0]  (!%p948_p11), %s1192_s0, 64, %s174_s27, [#allocation4]  }
  0x2f   : > { %p1193_p1 = scmp.ne.s32.totalorder %s1191_s5, 0  ;;  %p87_p2 = scmp.ne.s32.totalorder %s840_s17, %s836_s16 }
  0x30   : > { %p88_p4 = scmp.eq.s32.totalorder %s852_s20, 0  ;;  %p587_p6 = scmp.lt.s32.totalorder %s852_s20, 2 }
  0x31   : > { %s1220_s29 = smov (%p1193_p1, %s31_s29), 0  ;;  %p1195_p12 = scmp.eq.s32.totalorder %s920_s21, 1 }
  0x32   : > { %1194 = sst [smem:[#allocation15_spill]] %s1220_s29  ;;  %s77_s26 = ssub.s32 %s848_s19, %s1220_s29 }
  0x33   : > { %p78_p8 = scmp.eq.s32.totalorder %s77_s26, 0  ;;  %p89_p9 = por %p88_p4, %p87_p2 }
  0x34   : > { %p992_p13 = por %p1195_p12, %p87_p2  ;;  %s195_s7 = sand.u32 1, %s852_s20  }
  0x35   : > { %s1000_s8 = scalar_select %p78_p8, %s840_s17, %s80_s30  }
  0x36   : > { %s1196_s6 = scalar_select %p992_p13, 1, 0 }
  0x37   : > { %s197_s27 = sand.u32 1, %s840_s17   ;;  %s522_s9 = sshll.u32 %s848_s19, 6 }
  0x38   : > { %s521_s5 = sshll.u32 %s197_s27, 2  ;;  %s1197_s2 = sld [smem:[#allocation17_spill]] }
  0x39   : > { %s199_s13 = scalar_lea.vmem [#allocation8], %s521_s5  ;;  %p1009_p3 = pnand %p587_p6, %p89_p9 }
  0x3a   : > { %s206_s14 = sshll.u32 %s199_s13, 4  ;;  %s1015_s30 = smul.u32 24, %s197_s27  ;;  %s1013_s14 = int_to_ptr.vmem [resolvable:$true] %s206_s14 }
  0x3b   : > { %s1198_s22 = scalar_select %p1009_p3, 1, 0 }
  0x3c   : > { %s1017_s26 = scalar_lea.sflag [#allocation4], %s195_s7  ;;  %p1182_p7 = pneg %p1009_p3 }
  0x3e   : > { %s1007_s12 = scalar_lea.hbm %s1197_s2, %s522_s9  ;;  %s679_s11 = scalar_lea.hbm %s1197_s2, 128 }
  0x3f   : > { %s674_s9 = scalar_lea.hbm %s1007_s12, 64  ;;  %p680_p2 = scmp.lt.u32.totalorder %s1007_s12, %s1197_s2 }
  0x40   : > { %p675_p5 = scmp.ne.s32.totalorder %s1007_s12, %s674_s9  ;;  %p681_p4 = scmp.lt.u32.totalorder %s679_s11, %s674_s9 }
  0x41   : > { %p683_p8 = scmp.lt.u32.totalorder %s674_s9, %s1007_s12 }
  0x42   : > { %p677_p10 = pnand %p1182_p7, %p675_p5  ;;  %p682_p6 = por %p681_p4, %p680_p2 }
  0x44   : > { %p678_p1 = pneg %p677_p10  ;;  %p684_p9 = por %p683_p8, %p682_p6 }
  0x46   : > { %p685_p12 = pnand %p684_p9, %p678_p1 }
  0x48   : > { %688 = shalt.err (!%p685_p12)
}
  0x49   : > { %s689_s7 = scalar_lea.vmem %s1013_s14, 64  ;;  %s855_s27 = smov [#allocation8]  }
  0x4a   : > { %p690_p5 = scmp.ne.s32.totalorder %s1013_s14, %s689_s7  ;;  %s694_s5 = sshll.u32 %s855_s27, 4  ;;  %s695_s5 = int_to_ptr.vmem [resolvable:$false] %s694_s5 }
  0x4b   : > { %s696_s0 = scalar_lea.vmem %s695_s5, 128  ;;  %p697_p13 = scmp.lt.s32.totalorder %s1013_s14, %s695_s5 }
  0x4c   : > { %p692_p10 = pnand %p690_p5, %p1182_p7  ;;  %p698_p2 = scmp.lt.s32.totalorder %s696_s0, %s689_s7 }
  0x4e   : > { %p693_p0 = pneg %p692_p10  ;;  %p699_p4 = por %p698_p2, %p697_p13 }
  0x50   : > { %p700_p6 = pnand %p699_p4, %p693_p0 }
  0x52   : > { %703 = shalt.err (!%p700_p6)
}
  0x53   : > { %577 = dma.hbm_to_vmem [thread:$0]  (!%p1009_p3), %s1007_s12, 64, %s1013_s14, %s1017_s26  }
  0x54   : > { %s856_s9 = smov [#allocation6]   ;;  %s217_s11 = scalar_lea.vmem [#allocation9], %s1015_s30 }
  0x55   : > { %s184_s10 = sshll.u32 %s856_s9, 4  ;;  %s225_s13 = sshll.u32 %s217_s11, 4  ;;  %s185_s10 = int_to_ptr.vmem [resolvable:$true] %s184_s10  ;;  %s1046_s13 = int_to_ptr.vmem [resolvable:$true] %s225_s13 }
  0x56   : > { %s551_s7 = smul.u32 384, %s848_s19  ;;  %s704_s0 = scalar_lea.hbm %s1172_s1, 64 }
  0x57   : > { %p705_p0 = scmp.ne.s32.totalorder %s1172_s1, %s704_s0  ;;  %p1199_p13 = pneg %p948_p11 }
  0x58   : > { %p711_p9 = scmp.lt.u32.totalorder %s704_s0, %s1172_s1 }
  0x59   : > { %p707_p1 = pnand %p705_p0, %p1199_p13 }
  0x5b   : > { %p708_p8 = pneg %p707_p1 }
  0x5d   : > { %p713_p12 = pnand %p711_p9, %p708_p8 }
  0x5f   : > { %716 = shalt.err (!%p713_p12)
}
  0x60   : > { %s717_s30 = scalar_lea.vmem %s185_s10, 64  ;;  %p1200_p10 = pmov %p1199_p13 }
  0x61   : > { %p718_p5 = scmp.ne.s32.totalorder %s185_s10, %s717_s30  ;;  %p725_p6 = scmp.lt.s32.totalorder %s185_s10, %s185_s10 }
  0x62   : > { %p726_p7 = scmp.lt.s32.totalorder %s717_s30, %s717_s30 }
  0x63   : > { %p720_p2 = pnand %p718_p5, %p1200_p10 }
  0x64   : > { %p727_p3 = por %p726_p7, %p725_p6 }
  0x65   : > { %p721_p4 = pneg %p720_p2 }
  0x67   : > { %p728_p0 = pnand %p727_p3, %p721_p4 }
  0x69   : > { %731 = shalt.err (!%p728_p0)
}
  0x6a   : > { %573 = dma.hbm_to_vmem [thread:$0]  (!%p948_p11), %s1172_s1, 64, %s185_s10, [#allocation7]  }
  0x6b   : > { %s1072_s27 = scalar_lea.hbm %s1174_s3, %s551_s7  ;;  %p1201_p3 = scmp.ne.s32.totalorder %s1198_s22, 0 }
  0x6c   : > { %s732_s5 = scalar_lea.hbm %s1072_s27, 384  ;;  %s737_s12 = scalar_lea.hbm %s1174_s3, 768 }
  0x6d   : > { %p733_p7 = scmp.ne.s32.totalorder %s1072_s27, %s732_s5  ;;  %p1202_p13 = pneg %p1201_p3 }
  0x6e   : > { %p738_p11 = scmp.lt.u32.totalorder %s1072_s27, %s1174_s3  ;;  %p739_p9 = scmp.lt.u32.totalorder %s737_s12, %s732_s5 }
  0x6f   : > { %p735_p1 = pnand %p733_p7, %p1202_p13  ;;  %p741_p5 = scmp.lt.u32.totalorder %s732_s5, %s1072_s27 }
  0x70   : > { %p740_p12 = por %p739_p9, %p738_p11 }
  0x71   : > { %p736_p8 = pneg %p735_p1 }
  0x72   : > { %p742_p10 = por %p741_p5, %p740_p12 }
  0x74   : > { %p743_p2 = pnand %p742_p10, %p736_p8 }
  0x76   : > { %746 = shalt.err (!%p743_p2)
}
  0x77   : > { %s747_s7 = scalar_lea.vmem %s1046_s13, 384  ;;  %p1203_p6 = pmov %p1202_p13 }
  0x78   : > { %p748_p4 = scmp.ne.s32.totalorder %s1046_s13, %s747_s7  ;;  %s857_s30 = smov [#allocation9]  }
  0x79   : > { %s752_s2 = sshll.u32 %s857_s30, 4  ;;  %s753_s2 = int_to_ptr.vmem [resolvable:$false] %s752_s2 }
  0x7a   : > { %p750_p0 = pnand %p748_p4, %p1203_p6  ;;  %s754_s29 = scalar_lea.vmem %s753_s2, 768 }
  0x7b   : > { %p755_p13 = scmp.lt.s32.totalorder %s1046_s13, %s753_s2  ;;  %p756_p1 = scmp.lt.s32.totalorder %s754_s29, %s747_s7 }
  0x7c   : > { %p751_p7 = pneg %p750_p0 }
  0x7d   : > { %p757_p11 = por %p756_p1, %p755_p13 }
  0x7f   : > { %p758_p9 = pnand %p757_p11, %p751_p7 }
  0x81   : > { %761 = shalt.err (!%p758_p9)
}
  0x82   : > { %s858_s9 = smov 128   ;;  %s859_s11 = smov 8  }
  0x83   : > { %580 = dma.hbm_to_vmem [thread:$0]  (!%p1201_p3), %s1072_s27, 384, %s1046_s13, %s1017_s26, %s858_s9, %s858_s9, %s859_s11  }
  0x84   : > { %p1204_p8 = scmp.ne.s32.totalorder %s1189_s25, 0 }
  0x85   : > { %p1205_p12 = scmp.eq.s32.totalorder (!%p1204_p8), %s920_s21, 0 }
  0x86   : > { %237 = sbr.rel (%p1204_p8) target bundleno = 391 (0x187), region = 36 }
  0x8d   : > { %815 = dma.done.wait (%p1205_p12), [#allocation4], 64   ;;  %p1206_p5 = pmov %p1205_p12 }
  0x8f   : > { %817 = vsyncadd (%p1206_p5), [#allocation4], 4294967232  ;;  %p1207_p10 = pmov %p1206_p5 }
  0x90   : > { %p1208_p2 = pmov %p1206_p5 }
  0x91   : > { %819 = dma.done.wait (%p1207_p10), [#allocation7], 64  }
  0x92   : > { %821 = vsyncadd (%p1208_p2), [#allocation7], 4294967232  ;;  %s247_s22 = sand.u32 1, %s920_s21   ;;  %s1110_s26 = sand.u32 1, %s836_s16  }
  0x93   : > { %s527_s25 = sshll.u32 %s1110_s26, 2  ;;  %s248_s13 = scalar_lea.sflag [#allocation4], %s247_s22 }
  0x94   : > { %s251_s27 = scalar_lea.vmem [#allocation8], %s527_s25  ;;  %p1209_p3 = scmp.ne.s32.totalorder %s1187_s23, 0 }
  0x96   : > { %823 = dma.done.wait (%p1209_p3), %s248_s13, 448  }
  0x97   : > { %825 = vsyncadd (%p1209_p3), %s248_s13, 4294966848  ;;  %v860_v0 = vmov 0.0|0.0   ;;  %s552_s5 = smul.u32 24, %s1110_s26  ;;  %vm861_vm0 = vmmov 0   ;;  %v862_v1 = vmov 0.0   ;;  %vm299_vm1 = vcmask 191488  }
  0x98   : > { %547 = vmatprep.subr.bf16.mxu0 %v860_v0  ;;  %544 = vmatprep.mubr.msk.f32.mxu0 %vm861_vm0, %v862_v1  ;;  %v294_v2 = vld [vmem:[#allocation3] sm:$0xf]  ;;  %v295_v3 = vld [vmem:[#allocation6] sm:$0xf]  ;;  %v296_v4 = vld [vmem:[%s251_s27] sm:$0xf] }
  0x99   : > { %v297_v5 = vmul.f32 %v296_v4, %v295_v3  ;;  %s260_s21 = scalar_lea.vmem [#allocation9], %s552_s5  ;;  %vm305_vm2 = vcmask 195584   ;;  %s289_s23 = scalar_lea.vmem [#allocation10], %s527_s25 }
  0x9a   : > { %v301_v6 = vld [vmem:[%s260_s21] sm:$0xff]  ;;  %v302_v7 = vld [vmem:[%s260_s21 + $0x8] sm:$0xff]  ;;  %v303_v10 = vld [vmem:[%s260_s21 + $0x10] sm:$0xff]  ;;  %s395_s28 = sshll.u32 %s289_s23, 4  ;;  %s531_s0 = sshll.u32 %s844_s18, 6  ;;  %s1119_s28 = int_to_ptr.vmem [resolvable:$true] %s395_s28 }
  0x9b   : > { %v548_v8 = vpack.c.bf16 %v302_v7, %v301_v6  ;;  %v298_v9 = vadd.f32 %v297_v5, %v294_v2  ;;  %s1124_s14 = scalar_lea.hbm %s1175_s4, %s531_s0  ;;  %s381_s7 = scalar_lea.sflag [#allocation5], %s1110_s26 }
  0x9c   : > { %s762_s30 = scalar_lea.vmem %s1119_s28, 64  ;;  %p1210_p6 = scmp.ne.s32.totalorder %s1196_s6, 0 }
  0x9d   : > { %549 = vmatpush3.bf16.msra.mxu0 %v548_v8  ;;  %300 = vst.msk [vmem:[#allocation2] sm:$0xf] %vm299_vm1, %v298_v9  ;;  %p763_p4 = scmp.ne.s32.totalorder %s1119_s28, %s762_s30  ;;  %s863_s18 = smov [#allocation10]  }
  0x9e   : > { %542 = vmatprep.subr.mxu0 %v862_v1  ;;  %s766_s2 = sshll.u32 %s863_s18, 4  ;;  %s767_s2 = int_to_ptr.vmem [resolvable:$false] %s766_s2 }
  0x9f   : > { %p764_p0 = pnand %p763_p4, %p1210_p6  ;;  %s768_s29 = scalar_lea.vmem %s767_s2, 128 }
  0xa0   : > { %p769_p13 = scmp.lt.s32.totalorder %s1119_s28, %s767_s2  ;;  %p770_p1 = scmp.lt.s32.totalorder %s768_s29, %s762_s30 }
  0xa1   : > { %543 = vmatpush3.msra.mxu0 %v303_v10  ;;  %p765_p7 = pneg %p764_p0 }
  0xa2   : > { %p771_p11 = por %p770_p1, %p769_p13 }
  0xa4   : > { %v304_v11 = vld [vmem:[#allocation2] sm:$0xf]  ;;  %p772_p9 = pnand %p771_p11, %p765_p7 }
  0xa5   : > { %545 = vmatmul.mubr.msk.f32.vlgmr.msra.gmra.mrb[0].mxu0 %vm305_vm2, %v304_v11 }
 0x178   : > { %v375_v12 = vpop.f32.mrb[0].mxu0 }
 0x179   : > { %379 = vst [vmem:[%s289_s23] sm:$0xf] %v375_v12  ;;  %v546_v13 = vpop.f32.mrb[1].mxu0 }
 0x17a   : > { %775 = shalt.err (!%p772_p9)
}
 0x17b   : > { %s776_s9 = scalar_lea.hbm %s1124_s14, 64  ;;  %s780_s26 = scalar_lea.hbm %s1175_s4, 128 }
 0x17c   : > { %p777_p8 = scmp.ne.s32.totalorder %s1124_s14, %s776_s9  ;;  %p781_p10 = scmp.lt.u32.totalorder %s1124_s14, %s1175_s4 }
 0x17d   : > { %p782_p2 = scmp.lt.u32.totalorder %s780_s26, %s776_s9  ;;  %p784_p4 = scmp.lt.u32.totalorder %s776_s9, %s1124_s14 }
 0x17e   : > { %p778_p12 = pnand %p777_p8, %p1210_p6 }
 0x17f   : > { %p783_p3 = por %p782_p2, %p781_p10 }
 0x180   : > { %p779_p5 = pneg %p778_p12 }
 0x181   : > { %p785_p0 = por %p784_p4, %p783_p3 }
 0x183   : > { %p786_p7 = pnand %p785_p0, %p779_p5 }
 0x185   : > { %789 = shalt.err (!%p786_p7)
}
 0x186   : > { %565 = dma.vmem_to_hbm [thread:$0]  (%p1210_p6), %s1119_s28, 64, %s1124_s14, %s381_s7  }
 0x187 PF: > { %s407_s27 = sand.u32 1, %s832_s15   ;;  %p1211_p13 = scmp.ne.s32.totalorder %s1188_s24, 0 }
 0x188   : > { %p1212_p1 = scmp.ge.s32.totalorder %s852_s20, 2  ;;  %s408_s5 = scalar_lea.sflag [#allocation5], %s407_s27 }
 0x18a   : > { %p582_p11 = pnand %p1212_p1, %p1211_p13 }
 0x18c   : > { %827 = dma.done.wait (!%p582_p11), %s408_s5, 64  }
 0x18d   : > { %829 = vsyncadd (!%p582_p11), %s408_s5, 4294967232  ;;  %s19_s20 = sadd.s32 1, %s852_s20   ;;  %s1213_s6 = sld [smem:[#allocation15_spill]] }
 0x18e   : > { %p16_p9 = scmp.ge.s32.totalorder %s19_s20, 4   ;;  %s1214_s15 = smov %s836_s16 }
 0x18f   : > { %s1215_s16 = smov %s840_s17  ;;  %s1216_s17 = smov %s1000_s8 }
 0x190   : > { %s1217_s18 = smov %s848_s19  ;;  %18 = sbr.rel (!%p16_p9) target bundleno = 9 (0x9), region = 103 }
 0x193   : > { %s1218_s19 = smov %s1213_s6 }
 0x197   :  { %413 = vsyncpa [#allocation4], 1 }
 0x198   :  { %415 = vsyncpa [#allocation4 + $0x1], 1 }
 0x199   :  { %416 = vsyncpa [#allocation7], 1 }
 0x19a   :  { %417 = vsyncpa [#allocation5], 1 }
 0x19b   :  { %419 = vsyncpa [#allocation5 + $0x1], 1 }

</bundles_post_ra>
